<compile_context>
chip_gen: v7x
topology: tpu7x:2x2x1
jax: 0.10.0
libtpu: 0.0.40
codegen_flags: <defaults>
</compile_context>

<pallas_src>
import functools

import jax
import jax.numpy as jnp
from jax.experimental import pallas as pl
from jax.experimental.pallas import tpu as pltpu


def _round_up(n, m):
    return ((n + m - 1) // m) * m


# ---------------------------------------------------------------------------
# Kernel
# ---------------------------------------------------------------------------
def _make_temporal_block_kernel(*, ksize, dilation, c_out, l_pad, padl,
                                bloc, has_down):
    # Lane offset of conv tap j inside the left-padded length axis.
    offs = [padl - (ksize - 1 - j) * dilation for j in range(ksize)]

    def body(x_ref, w1_ref, b1_ref, w2_ref, b2_ref, wd_ref, bd_ref,
             o_ref, h1p_ref):
        # Zero the causal-pad lanes of the h1 scratch once per grid step.
        # With the default single grid step this is a single unmasked
        # (C_out, 128) store for the whole call.
        if padl > 0:
            h1p_ref[:, :padl] = jnp.zeros((c_out, padl), h1p_ref.dtype)

        for b in range(bloc):                               # static, small
            # ---- conv1: k accumulated per-tap dots (no im2col slab) -------
            y1 = jnp.dot(w1_ref[0], x_ref[b, :, offs[0]:offs[0] + l_pad],
                         preferred_element_type=jnp.float32)
            for j in range(1, ksize):
                y1 = y1 + jnp.dot(w1_ref[j],
                                  x_ref[b, :, offs[j]:offs[j] + l_pad],
                                  preferred_element_type=jnp.float32)
            h1 = jnp.maximum(y1 + b1_ref[...], 0.0)
            # TODO(synk): nn.Dropout is stochastic in train mode; eval-mode
            # identity here (would need pltpu.prng_* masking for training).

            # ---- residual --------------------------------------------------
            if has_down:
                res = (jnp.dot(wd_ref[...], x_ref[b, :, padl:padl + l_pad],
                               preferred_element_type=jnp.float32)
                       + bd_ref[...])
            else:
                res = x_ref[b, :, padl:padl + l_pad]        # identity, f32

            # ---- conv2: h1 through the zero-left-padded VMEM scratch -------
            if padl > 0:
                h1p_ref[:, padl:] = h1          # 128-aligned unmasked store
            y2 = jnp.dot(w2_ref[ksize - 1], h1,  # shift-0 tap reuses vregs
                         preferred_element_type=jnp.float32)
            for j in range(ksize - 1):
                y2 = y2 + jnp.dot(w2_ref[j],
                                  h1p_ref[:, offs[j]:offs[j] + l_pad],
                                  preferred_element_type=jnp.float32)
            h2 = jnp.maximum(y2 + b2_ref[...], 0.0)

            o_ref[b] = jnp.maximum(h2 + res, 0.0).astype(o_ref.dtype)

    if has_down:
        return body

    def body_no_down(x_ref, w1_ref, b1_ref, w2_ref, b2_ref, o_ref, h1p_ref):
        body(x_ref, w1_ref, b1_ref, w2_ref, b2_ref, None, None, o_ref,
             h1p_ref)

    return body_no_down


# ---------------------------------------------------------------------------
# Wrapper
# ---------------------------------------------------------------------------
@functools.partial(jax.jit,
                   static_argnames=("kernel_size", "dilation", "batch_groups"))
def temporal_block(x, params, *, kernel_size, dilation, batch_groups=1):
    """One TemporalBlock forward.  x: (B, C_in, L) f32 -> (B, C_out, L) f32.

    batch_groups: number of grid steps the batch is split into.  Use 1 on
    single-TensorCore parts (v5e/v6e); 2 on v7x so both cores get a
    "parallel" step.
    """
    B, C_in, L = x.shape
    w1, b1 = params["w1"], params["b1"]        # (C_out, C_in, k), (C_out,)
    w2, b2 = params["w2"], params["b2"]        # (C_out, C_out, k), (C_out,)
    wd, bd = params["wd"], params["bd"]        # (C_out, C_in, 1)/(C_out,) or None
    C_out, _, k = w1.shape
    assert k == kernel_size
    assert B % batch_groups == 0
    bloc = B // batch_groups
    has_down = wd is not None

    pad = (kernel_size - 1) * dilation
    l_pad = _round_up(L, 128)                  # lane-dense output tiles
    padl = _round_up(pad, 128)                 # lane-aligned causal left pad
    l_tot = padl + l_pad                       # multiple of 128

    # Causal left pad (lane-aligned) + right pad to the lane-aligned length,
    # done once here so every conv tap in the kernel is a static ref slice.
    x_pad = jnp.pad(x, ((0, 0), (0, 0), (padl, l_pad - L)))

    # Per-tap weight layout (k, C_out, C_*) so w_ref[j] is a static 2D slice.
    w1s = jnp.transpose(w1, (2, 0, 1)).astype(jnp.float32)
    w2s = jnp.transpose(w2, (2, 0, 1)).astype(jnp.float32)
    b1s = b1[:, None].astype(jnp.float32)
    b2s = b2[:, None].astype(jnp.float32)

    args = [x_pad, w1s, b1s, w2s, b2s]
    in_specs = [
        pl.BlockSpec((bloc, C_in, l_tot), lambda g: (g, 0, 0)),
        pl.BlockSpec(w1s.shape, lambda g: (0, 0, 0)),
        pl.BlockSpec(b1s.shape, lambda g: (0, 0)),
        pl.BlockSpec(w2s.shape, lambda g: (0, 0, 0)),
        pl.BlockSpec(b2s.shape, lambda g: (0, 0)),
    ]
    if has_down:
        wds = wd[:, :, 0].astype(jnp.float32)          # (C_out, C_in)
        bds = bd[:, None].astype(jnp.float32)          # (C_out, 1)
        args += [wds, bds]
        in_specs += [
            pl.BlockSpec(wds.shape, lambda g: (0, 0)),
            pl.BlockSpec(bds.shape, lambda g: (0, 0)),
        ]

    kernel = _make_temporal_block_kernel(
        ksize=kernel_size, dilation=dilation, c_out=C_out, l_pad=l_pad,
        padl=padl, bloc=bloc, has_down=has_down)

    out = pl.pallas_call(
        kernel,
        out_shape=jax.ShapeDtypeStruct((B, C_out, l_pad), jnp.float32),
        grid=(batch_groups,),
        in_specs=in_specs,
        out_specs=pl.BlockSpec((bloc, C_out, l_pad), lambda g: (g, 0, 0)),
        scratch_shapes=[pltpu.VMEM((C_out, l_tot), jnp.float32)],
        compiler_params=pltpu.CompilerParams(
            dimension_semantics=("parallel",)),
    )(*args)

    return out[:, :, :L]


# ---------------------------------------------------------------------------
# Parameter init (mirrors the PyTorch module: weight_norm + N(0, 0.01) weights)
# ---------------------------------------------------------------------------
def _weight_norm_effective(v):
    # weight_norm(dim=0): W = g * v / ||v||, with g initialized to ||v_init||,
    # so the effective initial weight equals v.
    norm = jnp.sqrt(jnp.sum(v * v, axis=(1, 2), keepdims=True))
    return norm * v / norm


def init_temporal_block_params(key, n_inputs, n_outputs, kernel_size):
    k1, k2, k3, k4, k5, k6 = jax.random.split(key, 6)
    w1 = _weight_norm_effective(
        0.01 * jax.random.normal(k1, (n_outputs, n_inputs, kernel_size),
                                 jnp.float32))
    b1 = 0.05 * jax.random.normal(k2, (n_outputs,), jnp.float32)
    w2 = _weight_norm_effective(
        0.01 * jax.random.normal(k3, (n_outputs, n_outputs, kernel_size),
                                 jnp.float32))
    b2 = 0.05 * jax.random.normal(k4, (n_outputs,), jnp.float32)
    if n_inputs != n_outputs:
        wd = 0.01 * jax.random.normal(k5, (n_outputs, n_inputs, 1), jnp.float32)
        bd = 0.05 * jax.random.normal(k6, (n_outputs,), jnp.float32)
    else:
        wd, bd = None, None
    return dict(w1=w1, b1=b1, w2=w2, b2=b2, wd=wd, bd=bd)


# ---------------------------------------------------------------------------
# Pure-JAX f32 reference (conv -> chomp -> relu twice, residual, relu)
# ---------------------------------------------------------------------------
def temporal_block_ref(x, params, kernel_size, dilation):
    B, _, L = x.shape

    def causal_conv(inp, w, b):
        c_out = w.shape[0]
        acc = jnp.zeros((B, c_out, L), jnp.float32) + b[None, :, None]
        for j in range(kernel_size):
            shift = (kernel_size - 1 - j) * dilation
            xs = inp if shift == 0 else jnp.pad(
                inp, ((0, 0), (0, 0), (shift, 0)))[:, :, :L]
            acc = acc + jnp.einsum("oi,bil->bol", w[:, :, j], xs)
        return acc

    h1 = jax.nn.relu(causal_conv(x, params["w1"], params["b1"]))
    h2 = jax.nn.relu(causal_conv(h1, params["w2"], params["b2"]))
    if params["wd"] is None:
        res = x
    else:
        res = (jnp.einsum("oi,bil->bol", params["wd"][:, :, 0], x)
               + params["bd"][None, :, None])
    return jax.nn.relu(h2 + res)


if __name__ == "__main__":
    key = jax.random.PRNGKey(0)
    B, L, ksize = 2, 32, 3

    key, kx, ka, kb = jax.random.split(key, 4)
    x = jax.random.normal(kx, (B, 8, L), jnp.float32)

    # Block A: C_in == C_out -> identity residual, dilation 1.
    pa = init_temporal_block_params(ka, 8, 8, ksize)
    ya = jax.block_until_ready(
        temporal_block(x, pa, kernel_size=ksize, dilation=1))
    ra = temporal_block_ref(x, pa, ksize, 1)
    assert ya.shape == (B, 8, L) and ya.dtype == jnp.float32
    assert float(jnp.max(jnp.abs(ya - ra))) < 1e-2

    # Same block with the 2-way "parallel" batch grid (v7x dual-core path).
    ya2 = jax.block_until_ready(
        temporal_block(x, pa, kernel_size=ksize, dilation=1, batch_groups=2))
    assert float(jnp.max(jnp.abs(ya2 - ra))) < 1e-2

    # Block B: C_in != C_out -> 1x1 downsample residual, dilation 2.
    pb = init_temporal_block_params(kb, 8, 16, ksize)
    yb = jax.block_until_ready(
        temporal_block(ya, pb, kernel_size=ksize, dilation=2))
    rb = temporal_block_ref(ra, pb, ksize, 2)
    assert yb.shape == (B, 16, L) and yb.dtype == jnp.float32
    assert float(jnp.max(jnp.abs(yb - rb))) < 1e-2

    print("KERNEL_OK")
</pallas_src>

<mosaic_0001>
module attributes {stable_mosaic.version = 11 : i64} {
  func.func @body_no_down(%arg0: i32, %arg1: memref<2x8x256xf32, #tpu.memory_space<vmem>>, %arg2: memref<3x8x8xf32, #tpu.memory_space<vmem>>, %arg3: memref<8x1xf32, #tpu.memory_space<vmem>>, %arg4: memref<3x8x8xf32, #tpu.memory_space<vmem>>, %arg5: memref<8x1xf32, #tpu.memory_space<vmem>>, %arg6: memref<2x8x128xf32, #tpu.memory_space<vmem>>, %arg7: memref<8x256xf32, #tpu.memory_space<vmem>>) attributes {dimension_semantics = [#tpu.dimension_semantics<parallel>], iteration_bounds = array<i64: 1>, scalar_prefetch = 0 : i64, scratch_operands = 1 : i64, tpu.core_type = #tpu.core_type<tc>, window_params = [{transform_indices = @transform_0, window_bounds = array<i64: 2, 8, 256>}, {pipeline_mode = #tpu.pipeline_mode<synchronous>, transform_indices = @transform_1, window_bounds = array<i64: 3, 8, 8>}, {pipeline_mode = #tpu.pipeline_mode<synchronous>, transform_indices = @transform_2, window_bounds = array<i64: 8, 1>}, {pipeline_mode = #tpu.pipeline_mode<synchronous>, transform_indices = @transform_3, window_bounds = array<i64: 3, 8, 8>}, {pipeline_mode = #tpu.pipeline_mode<synchronous>, transform_indices = @transform_4, window_bounds = array<i64: 8, 1>}, {transform_indices = @transform_5, window_bounds = array<i64: 2, 8, 128>}]} {
    %cst = arith.constant 0.000000e+00 : f32
    %0 = vector.broadcast %cst : f32 to vector<8x128xf32>
    %c0 = arith.constant 0 : index
    %c0_0 = arith.constant 0 : index
    %1 = vector.load %arg7[%c0, %c0_0] : memref<8x256xf32, #tpu.memory_space<vmem>>, vector<8x128xf32>
    tpu.vector_store %arg7[%c0, %c0_0], %0 {strides = array<i32>} : memref<8x256xf32, #tpu.memory_space<vmem>>, vector<8x128xf32>,
    %c0_1 = arith.constant 0 : index
    %c0_2 = arith.constant 0 : index
    %c0_3 = arith.constant 0 : index
    %2 = vector.load %arg2[%c0_1, %c0_2, %c0_3] : memref<3x8x8xf32, #tpu.memory_space<vmem>>, vector<1x8x8xf32>
    %3 = vector.shape_cast %2 : vector<1x8x8xf32> to vector<8x8xf32>
    %c0_4 = arith.constant 0 : index
    %c0_5 = arith.constant 0 : index
    %c126 = arith.constant 126 : index
    %4 = vector.load %arg1[%c0_4, %c0_5, %c126] : memref<2x8x256xf32, #tpu.memory_space<vmem>>, vector<1x8x128xf32>
    %5 = vector.shape_cast %4 : vector<1x8x128xf32> to vector<8x128xf32>
    %cst_6 = arith.constant dense<0.000000e+00> : vector<8x128xf32>
    %6 = tpu.matmul %3, %5, %cst_6 {dimension_numbers = #tpu.dot_dimension_numbers<[1], [0], [0], [1], [0, 0, 1, 1], [], []>} : vector<8x8xf32>, vector<8x128xf32>, vector<8x128xf32> -> vector<8x128xf32>
    %c1 = arith.constant 1 : index
    %c0_7 = arith.constant 0 : index
    %c0_8 = arith.constant 0 : index
    %7 = vector.load %arg2[%c1, %c0_7, %c0_8] : memref<3x8x8xf32, #tpu.memory_space<vmem>>, vector<1x8x8xf32>
    %8 = vector.shape_cast %7 : vector<1x8x8xf32> to vector<8x8xf32>
    %c0_9 = arith.constant 0 : index
    %c0_10 = arith.constant 0 : index
    %c127 = arith.constant 127 : index
    %9 = vector.load %arg1[%c0_9, %c0_10, %c127] : memref<2x8x256xf32, #tpu.memory_space<vmem>>, vector<1x8x128xf32>
    %10 = vector.shape_cast %9 : vector<1x8x128xf32> to vector<8x128xf32>
    %cst_11 = arith.constant dense<0.000000e+00> : vector<8x128xf32>
    %11 = tpu.matmul %8, %10, %cst_11 {dimension_numbers = #tpu.dot_dimension_numbers<[1], [0], [0], [1], [0, 0, 1, 1], [], []>} : vector<8x8xf32>, vector<8x128xf32>, vector<8x128xf32> -> vector<8x128xf32>
    %12 = arith.addf %6, %11 : vector<8x128xf32>
    %c2 = arith.constant 2 : index
    %c0_12 = arith.constant 0 : index
    %c0_13 = arith.constant 0 : index
    %13 = vector.load %arg2[%c2, %c0_12, %c0_13] : memref<3x8x8xf32, #tpu.memory_space<vmem>>, vector<1x8x8xf32>
    %14 = vector.shape_cast %13 : vector<1x8x8xf32> to vector<8x8xf32>
    %c0_14 = arith.constant 0 : index
    %c0_15 = arith.constant 0 : index
    %c128 = arith.constant 128 : index
    %15 = vector.load %arg1[%c0_14, %c0_15, %c128] : memref<2x8x256xf32, #tpu.memory_space<vmem>>, vector<1x8x128xf32>
    %16 = vector.shape_cast %15 : vector<1x8x128xf32> to vector<8x128xf32>
    %cst_16 = arith.constant dense<0.000000e+00> : vector<8x128xf32>
    %17 = tpu.matmul %14, %16, %cst_16 {dimension_numbers = #tpu.dot_dimension_numbers<[1], [0], [0], [1], [0, 0, 1, 1], [], []>} : vector<8x8xf32>, vector<8x128xf32>, vector<8x128xf32> -> vector<8x128xf32>
    %18 = arith.addf %12, %17 : vector<8x128xf32>
    %c0_17 = arith.constant 0 : index
    %c0_18 = arith.constant 0 : index
    %19 = vector.load %arg3[%c0_17, %c0_18] : memref<8x1xf32, #tpu.memory_space<vmem>>, vector<8x1xf32>
    %20 = vector.broadcast %19 : vector<8x1xf32> to vector<8x128xf32>
    %21 = arith.addf %18, %20 : vector<8x128xf32>
    %cst_19 = arith.constant 0.000000e+00 : f32
    %22 = vector.broadcast %cst_19 : f32 to vector<8x128xf32>
    %23 = arith.maximumf %21, %22 : vector<8x128xf32>
    %c0_20 = arith.constant 0 : index
    %c0_21 = arith.constant 0 : index
    %c128_22 = arith.constant 128 : index
    %24 = vector.load %arg1[%c0_20, %c0_21, %c128_22] : memref<2x8x256xf32, #tpu.memory_space<vmem>>, vector<1x8x128xf32>
    %25 = vector.shape_cast %24 : vector<1x8x128xf32> to vector<8x128xf32>
    %c0_23 = arith.constant 0 : index
    %c128_24 = arith.constant 128 : index
    %26 = vector.load %arg7[%c0_23, %c128_24] : memref<8x256xf32, #tpu.memory_space<vmem>>, vector<8x128xf32>
    tpu.vector_store %arg7[%c0_23, %c128_24], %23 {strides = array<i32>} : memref<8x256xf32, #tpu.memory_space<vmem>>, vector<8x128xf32>,
    %c2_25 = arith.constant 2 : index
    %c0_26 = arith.constant 0 : index
    %c0_27 = arith.constant 0 : index
    %27 = vector.load %arg4[%c2_25, %c0_26, %c0_27] : memref<3x8x8xf32, #tpu.memory_space<vmem>>, vector<1x8x8xf32>
    %28 = vector.shape_cast %27 : vector<1x8x8xf32> to vector<8x8xf32>
    %cst_28 = arith.constant dense<0.000000e+00> : vector<8x128xf32>
    %29 = tpu.matmul %28, %23, %cst_28 {dimension_numbers = #tpu.dot_dimension_numbers<[1], [0], [0], [1], [0, 0, 1, 1], [], []>} : vector<8x8xf32>, vector<8x128xf32>, vector<8x128xf32> -> vector<8x128xf32>
    %c0_29 = arith.constant 0 : index
    %c0_30 = arith.constant 0 : index
    %c0_31 = arith.constant 0 : index
    %30 = vector.load %arg4[%c0_29, %c0_30, %c0_31] : memref<3x8x8xf32, #tpu.memory_space<vmem>>, vector<1x8x8xf32>
    %31 = vector.shape_cast %30 : vector<1x8x8xf32> to vector<8x8xf32>
    %c0_32 = arith.constant 0 : index
    %c126_33 = arith.constant 126 : index
    %32 = vector.load %arg7[%c0_32, %c126_33] : memref<8x256xf32, #tpu.memory_space<vmem>>, vector<8x128xf32>
    %cst_34 = arith.constant dense<0.000000e+00> : vector<8x128xf32>
    %33 = tpu.matmul %31, %32, %cst_34 {dimension_numbers = #tpu.dot_dimension_numbers<[1], [0], [0], [1], [0, 0, 1, 1], [], []>} : vector<8x8xf32>, vector<8x128xf32>, vector<8x128xf32> -> vector<8x128xf32>
    %34 = arith.addf %29, %33 : vector<8x128xf32>
    %c1_35 = arith.constant 1 : index
    %c0_36 = arith.constant 0 : index
    %c0_37 = arith.constant 0 : index
    %35 = vector.load %arg4[%c1_35, %c0_36, %c0_37] : memref<3x8x8xf32, #tpu.memory_space<vmem>>, vector<1x8x8xf32>
    %36 = vector.shape_cast %35 : vector<1x8x8xf32> to vector<8x8xf32>
    %c0_38 = arith.constant 0 : index
    %c127_39 = arith.constant 127 : index
    %37 = vector.load %arg7[%c0_38, %c127_39] : memref<8x256xf32, #tpu.memory_space<vmem>>, vector<8x128xf32>
    %cst_40 = arith.constant dense<0.000000e+00> : vector<8x128xf32>
    %38 = tpu.matmul %36, %37, %cst_40 {dimension_numbers = #tpu.dot_dimension_numbers<[1], [0], [0], [1], [0, 0, 1, 1], [], []>} : vector<8x8xf32>, vector<8x128xf32>, vector<8x128xf32> -> vector<8x128xf32>
    %39 = arith.addf %34, %38 : vector<8x128xf32>
    %c0_41 = arith.constant 0 : index
    %c0_42 = arith.constant 0 : index
    %40 = vector.load %arg5[%c0_41, %c0_42] : memref<8x1xf32, #tpu.memory_space<vmem>>, vector<8x1xf32>
    %41 = vector.broadcast %40 : vector<8x1xf32> to vector<8x128xf32>
    %42 = arith.addf %39, %41 : vector<8x128xf32>
    %cst_43 = arith.constant 0.000000e+00 : f32
    %43 = vector.broadcast %cst_43 : f32 to vector<8x128xf32>
    %44 = arith.maximumf %42, %43 : vector<8x128xf32>
    %45 = arith.addf %44, %25 : vector<8x128xf32>
    %cst_44 = arith.constant 0.000000e+00 : f32
    %46 = vector.broadcast %cst_44 : f32 to vector<8x128xf32>
    %47 = arith.maximumf %45, %46 : vector<8x128xf32>
    %c0_45 = arith.constant 0 : index
    %c0_46 = arith.constant 0 : index
    %c0_47 = arith.constant 0 : index
    %48 = vector.load %arg6[%c0_45, %c0_46, %c0_47] : memref<2x8x128xf32, #tpu.memory_space<vmem>>, vector<1x8x128xf32>
    %49 = vector.shape_cast %48 : vector<1x8x128xf32> to vector<8x128xf32>
    %50 = vector.shape_cast %47 : vector<8x128xf32> to vector<1x8x128xf32>
    tpu.vector_store %arg6[%c0_45, %c0_46, %c0_47], %50 {strides = array<i32>} : memref<2x8x128xf32, #tpu.memory_space<vmem>>, vector<1x8x128xf32>,
    %c0_48 = arith.constant 0 : index
    %c0_49 = arith.constant 0 : index
    %c0_50 = arith.constant 0 : index
    %51 = vector.load %arg2[%c0_48, %c0_49, %c0_50] : memref<3x8x8xf32, #tpu.memory_space<vmem>>, vector<1x8x8xf32>
    %52 = vector.shape_cast %51 : vector<1x8x8xf32> to vector<8x8xf32>
    %c1_51 = arith.constant 1 : index
    %c0_52 = arith.constant 0 : index
    %c126_53 = arith.constant 126 : index
    %53 = vector.load %arg1[%c1_51, %c0_52, %c126_53] : memref<2x8x256xf32, #tpu.memory_space<vmem>>, vector<1x8x128xf32>
    %54 = vector.shape_cast %53 : vector<1x8x128xf32> to vector<8x128xf32>
    %cst_54 = arith.constant dense<0.000000e+00> : vector<8x128xf32>
    %55 = tpu.matmul %52, %54, %cst_54 {dimension_numbers = #tpu.dot_dimension_numbers<[1], [0], [0], [1], [0, 0, 1, 1], [], []>} : vector<8x8xf32>, vector<8x128xf32>, vector<8x128xf32> -> vector<8x128xf32>
    %c1_55 = arith.constant 1 : index
    %c0_56 = arith.constant 0 : index
    %c0_57 = arith.constant 0 : index
    %56 = vector.load %arg2[%c1_55, %c0_56, %c0_57] : memref<3x8x8xf32, #tpu.memory_space<vmem>>, vector<1x8x8xf32>
    %57 = vector.shape_cast %56 : vector<1x8x8xf32> to vector<8x8xf32>
    %c1_58 = arith.constant 1 : index
    %c0_59 = arith.constant 0 : index
    %c127_60 = arith.constant 127 : index
    %58 = vector.load %arg1[%c1_58, %c0_59, %c127_60] : memref<2x8x256xf32, #tpu.memory_space<vmem>>, vector<1x8x128xf32>
    %59 = vector.shape_cast %58 : vector<1x8x128xf32> to vector<8x128xf32>
    %cst_61 = arith.constant dense<0.000000e+00> : vector<8x128xf32>
    %60 = tpu.matmul %57, %59, %cst_61 {dimension_numbers = #tpu.dot_dimension_numbers<[1], [0], [0], [1], [0, 0, 1, 1], [], []>} : vector<8x8xf32>, vector<8x128xf32>, vector<8x128xf32> -> vector<8x128xf32>
    %61 = arith.addf %55, %60 : vector<8x128xf32>
    %c2_62 = arith.constant 2 : index
    %c0_63 = arith.constant 0 : index
    %c0_64 = arith.constant 0 : index
    %62 = vector.load %arg2[%c2_62, %c0_63, %c0_64] : memref<3x8x8xf32, #tpu.memory_space<vmem>>, vector<1x8x8xf32>
    %63 = vector.shape_cast %62 : vector<1x8x8xf32> to vector<8x8xf32>
    %c1_65 = arith.constant 1 : index
    %c0_66 = arith.constant 0 : index
    %c128_67 = arith.constant 128 : index
    %64 = vector.load %arg1[%c1_65, %c0_66, %c128_67] : memref<2x8x256xf32, #tpu.memory_space<vmem>>, vector<1x8x128xf32>
    %65 = vector.shape_cast %64 : vector<1x8x128xf32> to vector<8x128xf32>
    %cst_68 = arith.constant dense<0.000000e+00> : vector<8x128xf32>
    %66 = tpu.matmul %63, %65, %cst_68 {dimension_numbers = #tpu.dot_dimension_numbers<[1], [0], [0], [1], [0, 0, 1, 1], [], []>} : vector<8x8xf32>, vector<8x128xf32>, vector<8x128xf32> -> vector<8x128xf32>
    %67 = arith.addf %61, %66 : vector<8x128xf32>
    %c0_69 = arith.constant 0 : index
    %c0_70 = arith.constant 0 : index
    %68 = vector.load %arg3[%c0_69, %c0_70] : memref<8x1xf32, #tpu.memory_space<vmem>>, vector<8x1xf32>
    %69 = vector.broadcast %68 : vector<8x1xf32> to vector<8x128xf32>
    %70 = arith.addf %67, %69 : vector<8x128xf32>
    %cst_71 = arith.constant 0.000000e+00 : f32
    %71 = vector.broadcast %cst_71 : f32 to vector<8x128xf32>
    %72 = arith.maximumf %70, %71 : vector<8x128xf32>
    %c1_72 = arith.constant 1 : index
    %c0_73 = arith.constant 0 : index
    %c128_74 = arith.constant 128 : index
    %73 = vector.load %arg1[%c1_72, %c0_73, %c128_74] : memref<2x8x256xf32, #tpu.memory_space<vmem>>, vector<1x8x128xf32>
    %74 = vector.shape_cast %73 : vector<1x8x128xf32> to vector<8x128xf32>
    %c0_75 = arith.constant 0 : index
    %c128_76 = arith.constant 128 : index
    %75 = vector.load %arg7[%c0_75, %c128_76] : memref<8x256xf32, #tpu.memory_space<vmem>>, vector<8x128xf32>
    tpu.vector_store %arg7[%c0_75, %c128_76], %72 {strides = array<i32>} : memref<8x256xf32, #tpu.memory_space<vmem>>, vector<8x128xf32>,
    %c2_77 = arith.constant 2 : index
    %c0_78 = arith.constant 0 : index
    %c0_79 = arith.constant 0 : index
    %76 = vector.load %arg4[%c2_77, %c0_78, %c0_79] : memref<3x8x8xf32, #tpu.memory_space<vmem>>, vector<1x8x8xf32>
    %77 = vector.shape_cast %76 : vector<1x8x8xf32> to vector<8x8xf32>
    %cst_80 = arith.constant dense<0.000000e+00> : vector<8x128xf32>
    %78 = tpu.matmul %77, %72, %cst_80 {dimension_numbers = #tpu.dot_dimension_numbers<[1], [0], [0], [1], [0, 0, 1, 1], [], []>} : vector<8x8xf32>, vector<8x128xf32>, vector<8x128xf32> -> vector<8x128xf32>
    %c0_81 = arith.constant 0 : index
    %c0_82 = arith.constant 0 : index
    %c0_83 = arith.constant 0 : index
    %79 = vector.load %arg4[%c0_81, %c0_82, %c0_83] : memref<3x8x8xf32, #tpu.memory_space<vmem>>, vector<1x8x8xf32>
    %80 = vector.shape_cast %79 : vector<1x8x8xf32> to vector<8x8xf32>
    %c0_84 = arith.constant 0 : index
    %c126_85 = arith.constant 126 : index
    %81 = vector.load %arg7[%c0_84, %c126_85] : memref<8x256xf32, #tpu.memory_space<vmem>>, vector<8x128xf32>
    %cst_86 = arith.constant dense<0.000000e+00> : vector<8x128xf32>
    %82 = tpu.matmul %80, %81, %cst_86 {dimension_numbers = #tpu.dot_dimension_numbers<[1], [0], [0], [1], [0, 0, 1, 1], [], []>} : vector<8x8xf32>, vector<8x128xf32>, vector<8x128xf32> -> vector<8x128xf32>
    %83 = arith.addf %78, %82 : vector<8x128xf32>
    %c1_87 = arith.constant 1 : index
    %c0_88 = arith.constant 0 : index
    %c0_89 = arith.constant 0 : index
    %84 = vector.load %arg4[%c1_87, %c0_88, %c0_89] : memref<3x8x8xf32, #tpu.memory_space<vmem>>, vector<1x8x8xf32>
    %85 = vector.shape_cast %84 : vector<1x8x8xf32> to vector<8x8xf32>
    %c0_90 = arith.constant 0 : index
    %c127_91 = arith.constant 127 : index
    %86 = vector.load %arg7[%c0_90, %c127_91] : memref<8x256xf32, #tpu.memory_space<vmem>>, vector<8x128xf32>
    %cst_92 = arith.constant dense<0.000000e+00> : vector<8x128xf32>
    %87 = tpu.matmul %85, %86, %cst_92 {dimension_numbers = #tpu.dot_dimension_numbers<[1], [0], [0], [1], [0, 0, 1, 1], [], []>} : vector<8x8xf32>, vector<8x128xf32>, vector<8x128xf32> -> vector<8x128xf32>
    %88 = arith.addf %83, %87 : vector<8x128xf32>
    %c0_93 = arith.constant 0 : index
    %c0_94 = arith.constant 0 : index
    %89 = vector.load %arg5[%c0_93, %c0_94] : memref<8x1xf32, #tpu.memory_space<vmem>>, vector<8x1xf32>
    %90 = vector.broadcast %89 : vector<8x1xf32> to vector<8x128xf32>
    %91 = arith.addf %88, %90 : vector<8x128xf32>
    %cst_95 = arith.constant 0.000000e+00 : f32
    %92 = vector.broadcast %cst_95 : f32 to vector<8x128xf32>
    %93 = arith.maximumf %91, %92 : vector<8x128xf32>
    %94 = arith.addf %93, %74 : vector<8x128xf32>
    %cst_96 = arith.constant 0.000000e+00 : f32
    %95 = vector.broadcast %cst_96 : f32 to vector<8x128xf32>
    %96 = arith.maximumf %94, %95 : vector<8x128xf32>
    %c1_97 = arith.constant 1 : index
    %c0_98 = arith.constant 0 : index
    %c0_99 = arith.constant 0 : index
    %97 = vector.load %arg6[%c1_97, %c0_98, %c0_99] : memref<2x8x128xf32, #tpu.memory_space<vmem>>, vector<1x8x128xf32>
    %98 = vector.shape_cast %97 : vector<1x8x128xf32> to vector<8x128xf32>
    %99 = vector.shape_cast %96 : vector<8x128xf32> to vector<1x8x128xf32>
    tpu.vector_store %arg6[%c1_97, %c0_98, %c0_99], %99 {strides = array<i32>} : memref<2x8x128xf32, #tpu.memory_space<vmem>>, vector<1x8x128xf32>,
    return
  }
  func.func @transform_0(%arg0: i32) -> (i32, i32, i32) {
    %c0_i32 = arith.constant 0 : i32
    %c0_i32_0 = arith.constant 0 : i32
    %c0_i32_1 = arith.constant 0 : i32
    return %arg0, %c0_i32, %c0_i32_0 : i32, i32, i32
  }
  func.func @transform_1(%arg0: i32) -> (i32, i32, i32) {
    %c0_i32 = arith.constant 0 : i32
    %c0_i32_0 = arith.constant 0 : i32
    %c0_i32_1 = arith.constant 0 : i32
    %c0_i32_2 = arith.constant 0 : i32
    return %c0_i32, %c0_i32_0, %c0_i32_1 : i32, i32, i32
  }
  func.func @transform_2(%arg0: i32) -> (i32, i32) {
    %c0_i32 = arith.constant 0 : i32
    %c0_i32_0 = arith.constant 0 : i32
    %c0_i32_1 = arith.constant 0 : i32
    return %c0_i32, %c0_i32_0 : i32, i32
  }
  func.func @transform_3(%arg0: i32) -> (i32, i32, i32) {
    %c0_i32 = arith.constant 0 : i32
    %c0_i32_0 = arith.constant 0 : i32
    %c0_i32_1 = arith.constant 0 : i32
    %c0_i32_2 = arith.constant 0 : i32
    return %c0_i32, %c0_i32_0, %c0_i32_1 : i32, i32, i32
  }
  func.func @transform_4(%arg0: i32) -> (i32, i32) {
    %c0_i32 = arith.constant 0 : i32
    %c0_i32_0 = arith.constant 0 : i32
    %c0_i32_1 = arith.constant 0 : i32
    return %c0_i32, %c0_i32_0 : i32, i32
  }
  func.func @transform_5(%arg0: i32) -> (i32, i32, i32) {
    %c0_i32 = arith.constant 0 : i32
    %c0_i32_0 = arith.constant 0 : i32
    %c0_i32_1 = arith.constant 0 : i32
    return %arg0, %c0_i32, %c0_i32_0 : i32, i32, i32
  }
}

</mosaic_0001>

<bundles_post_ra>
// kernel: temporal_block.1
= control target key start
LH: loop header
LB: loop body
LE: loop exit
PB: predicated region body
PF: predicated region fallthrough
CT: control target
= control target key end

     0   :  { %s1183_s20 = smov 2   ;;  %s1184_s21 = smov 1   ;;  %v1185_v2 = vmov 0.0   ;;  %vm1186_vm0 = vmmov 0   ;;  %s1365_s0 = inlined_call_operand.vmem [shape: f32[2,8,256], index: 0, kind: input, shape index: {}]   ;;  %s1366_s1 = inlined_call_operand.vmem [shape: f32[3,8,8], index: 1, kind: input, shape index: {}]   ;;  %s1367_s2 = inlined_call_operand.vmem [shape: f32[8,1], index: 2, kind: input, shape index: {}]   ;;  %s1368_s3 = inlined_call_operand.vmem [shape: f32[3,8,8], index: 3, kind: input, shape index: {}]   ;;  %s1369_s4 = inlined_call_operand.vmem [shape: f32[8,1], index: 4, kind: input, shape index: {}]   ;;  %s1370_s5 = inlined_call_operand.hbm [shape: f32[2,8,128], index: 5, kind: output, shape index: {}]  }
   0x1   :  { %v23_v0 = vld [vmem:[%s1365_s0] sm:$0xff]  ;;  %v1229_v1 = vld [vmem:[%s1365_s0 + $0x8] sm:$0xff]  ;;  %1089 = vmatprep.subr.mxu0 %v1185_v2  ;;  %1094 = vmatprep.subr.mxu1 %v1185_v2 }
   0x2   :  { %110 = vrot.lane.b32.xlu1 %v23_v0, %s1183_s20  ;;  %29 = vrot.lane.b32.xlu0 %v23_v0, %s1184_s21 }
   0x3   :  { %1091 = vmatprep.mubr.msk.f32.mxu0 %vm1186_vm0, %v1185_v2  ;;  %1096 = vmatprep.mubr.msk.f32.mxu1 %vm1186_vm0, %v1185_v2 }
   0x4   :  { %10 = vsyncpa [#allocation4], 0  ;;  %v1187_v3 = vmov 0   ;;  %v266_v4 = vld [vmem:[%s1367_s2] sm:$0xff]  ;;  %v1053_v5 = vld [vmem:[%s1365_s0 + $0x10] sm:$0xff]  ;;  %vm33_vm1 = vcmask 7168  }
   0x5   :  { %1157 = vset.pattern.permute.xlu0 %v1187_v3  ;;  %1158 = vset.pattern.permute.xlu1 %v1187_v3  ;;  %vm114_vm2 = vcmask 15360   ;;  %v1043_v10 = vld [vmem:[%s1366_s1 + $0x8] sm:$0xff]  ;;  %vm36_vm3 = vcmask 64512   ;;  %v1259_v11 = vld [vmem:[%s1366_s1] sm:$0xff]  ;;  %v1046_v14 = vld [vmem:[%s1366_s1 + $0x10] sm:$0xff] }
   0x6   :  { %112 = vrot.lane.b32.xlu1 %v1229_v1, %s1183_s20  ;;  %31 = vrot.lane.b32.xlu0 %v1229_v1, %s1184_s21  ;;  %v1283_v15 = vld [vmem:[%s1365_s0 + $0x18] sm:$0xff]  ;;  %v1290_v31 = vld [vmem:[%s1368_s3 + $0x10] sm:$0xff] }
   0x7   :  { %v516_v33 = vld [vmem:[%s1369_s4] sm:$0xff]  ;;  %v1051_v38 = vld [vmem:[%s1368_s3 + $0x8] sm:$0xff] }
   0x8   :  { %v277_v35 = vld [vmem:[%s1368_s3] sm:$0xff]  ;;  %s1188_s3 = smov [#allocation3]  }
   0x9   :  { %s1032_s4 = sshll.u32 %s1188_s3, 4  ;;  %s1033_s4 = int_to_ptr.vmem [resolvable:$true] %s1032_s4 }
   0xa   :  { %269 = vperm.xlu0 %1157, %v266_v4   ;;  %282 = vrot.lane.b32.xlu1 %v1185_v2, %s1183_s20  ;;  %s1159_s16 = scalar_lea.vmem %s1033_s4, 256  ;;  %p1164_p1 = scmp.lt.s32.totalorder %s1033_s4, %s1033_s4 }
   0xb   :  { %p1160_p0 = scmp.ne.s32.totalorder %s1033_s4, %s1159_s16  ;;  %p1165_p2 = scmp.lt.s32.totalorder %s1159_s16, %s1159_s16 }
   0xd   :  { %p1166_p3 = por %p1165_p2, %p1164_p1 }
   0xe   :  { %436 = vrot.lane.b32.xlu0 %v1185_v2, %s1184_s21  ;;  %536 = vrot.lane.b32.xlu1 %v1283_v15, %s1184_s21 }
   0xf   :  { %p1167_p4 = pnand %p1166_p3, %p1160_p0 }
  0x12   :  { %534 = vrot.lane.b32.xlu0 %v1053_v5, %s1184_s21 }
  0x16   :  { %613 = vrot.lane.b32.xlu0 %v1053_v5, %s1183_s20 }
  0x1a   :  { %770 = vperm.xlu0 %1157, %v266_v4  }
  0x74   :  { %v111_v6 = vpop.permute.xlu1 %110  ;;  %v30_v7 = vpop.permute.xlu0 %29 }
  0x78   :  { %v113_v8 = vpop.permute.xlu1 %112  ;;  %v32_v9 = vpop.permute.xlu0 %31 }
  0x79   :  { %v34_v12 = vsel %vm33_vm1, %v30_v7, %v32_v9  ;;  %v115_v13 = vsel %vm114_vm2, %v111_v6, %v113_v8 }
  0x7a   :  { %1090 = vmatpush3.msra.mxu0 %v34_v12  ;;  %1095 = vmatpush3.msra.mxu1 %v115_v13 }
  0x7b   :  { %1092 = vmatmul.mubr.msk.f32.vlgmr.msra.gmra.mrb[0].mxu0 %vm36_vm3, %v1043_v10  ;;  %1097 = vmatmul.mubr.msk.f32.vlgmr.msra.gmra.mrb[0].mxu1 %vm36_vm3, %v1259_v11 }
  0x7c   :  { %1099 = vmatprep.subr.mxu0 %v1185_v2  ;;  %1101 = vmatprep.mubr.msk.f32.mxu0 %vm1186_vm0, %v1185_v2  ;;  %v283_v17 = vpop.permute.xlu1 %282 }
  0x7d   :  { %1100 = vmatpush3.msra.mxu0 %v1229_v1  ;;  %1104 = vmatprep.subr.mxu1 %v1185_v2 }
  0x7e   :  { %1109 = vmatprep.subr.mxu0 %v1185_v2  ;;  %1106 = vmatprep.mubr.msk.f32.mxu1 %vm1186_vm0, %v1185_v2 }
  0x7f   :  { %1102 = vmatmul.mubr.msk.f32.vlgmr.msra.gmra.mrb[2].mxu0 %vm36_vm3, %v1046_v14 }
  0x80   :  { %1111 = vmatprep.mubr.msk.f32.mxu0 %vm1186_vm0, %v1185_v2  ;;  %v537_v28 = vpop.permute.xlu1 %536 }
  0x89   :  { %v270_v16 = vpop.permute.xlu0 %269 }
  0x8d   :  { %v437_v23 = vpop.permute.xlu0 %436 }
  0x91   :  { %v535_v29 = vpop.permute.xlu0 %534 }
  0x92   :  { %v538_v32 = vsel %vm33_vm1, %v535_v29, %v537_v28 }
  0x95   :  { %v614_v40 = vpop.permute.xlu0 %613 }
  0x99   :  { %v771_v3 = vpop.permute.xlu0 %770 }
 0x14e   :  { %v106_v18 = vpop.f32.mrb[0].mxu0  ;;  %v186_v19 = vpop.f32.mrb[0].mxu1 }
 0x14f   :  { %v187_v20 = vadd.f32 %v186_v19, %v106_v18  ;;  %v1093_v21 = vpop.f32.mrb[1].mxu0  ;;  %v1098_v22 = vpop.f32.mrb[1].mxu1 }
 0x152   :  { %v261_v24 = vpop.f32.mrb[2].mxu0 }
 0x153   :  { %v265_v25 = vadd.f32 %v261_v24, %v187_v20  ;;  %v1103_v26 = vpop.f32.mrb[3].mxu0 }
 0x155   :  { %v272_v27 = vadd.f32 %v270_v16, %v265_v25 }
 0x157   :  { %v273_v30 = vmax.f32 %v272_v27, 0.0 }
 0x159   :  { %284 = vrot.lane.b32.xlu1 %v273_v30, %s1183_s20  ;;  %1110 = vmatpush3.msra.mxu0 %v273_v30 }
 0x15a   :  { %1119 = vmatprep.subr.mxu0 %v1185_v2  ;;  %1112 = vmatmul.mubr.msk.f32.vlgmr.msra.gmra.mrb[4].mxu0 %vm36_vm3, %v1290_v31 }
 0x15b   :  { %1120 = vmatpush3.msra.mxu0 %v538_v32  ;;  %1121 = vmatprep.mubr.msk.f32.mxu0 %vm1186_vm0, %v1185_v2 }
 0x15c   :  { %1129 = vmatprep.subr.mxu0 %v1185_v2 }
 0x15d   :  { %438 = vrot.lane.b32.xlu1 %v273_v30, %s1184_s21 }
 0x15e   :  { %1122 = vmatmul.mubr.msk.f32.vlgmr.msra.gmra.mrb[6].mxu0 %vm36_vm3, %v1043_v10 }
 0x15f   :  { %1130 = vmatpush3.msra.mxu0 %v1283_v15  ;;  %1131 = vmatprep.mubr.msk.f32.mxu0 %vm1186_vm0, %v1185_v2 }
 0x160   :  { %1139 = vmatprep.subr.mxu0 %v1185_v2 }
 0x161   :  { %615 = vrot.lane.b32.xlu1 %v1283_v15, %s1183_s20 }
 0x162   :  { %1132 = vmatmul.mubr.msk.f32.vlgmr.msra.gmra.mrb[8].mxu0 %vm36_vm3, %v1046_v14 }
 0x163   :  { %1141 = vmatprep.mubr.msk.f32.mxu0 %vm1186_vm0, %v1185_v2 }
 0x165   :  { %782 = vrot.lane.b32.xlu1 %v1185_v2, %s1183_s20 }
 0x169   :  { %935 = vrot.lane.b32.xlu1 %v1185_v2, %s1184_s21 }
 0x16d   :  { %519 = vperm.xlu1 %1158, %v516_v33  }
 0x1cb   :  { %v285_v34 = vpop.permute.xlu1 %284 }
 0x1cc   :  { %v286_v36 = vsel %vm114_vm2, %v283_v17, %v285_v34 }
 0x1cd   :  { %1105 = vmatpush3.msra.mxu1 %v286_v36 }
 0x1ce   :  { %1107 = vmatmul.mubr.msk.f32.vlgmr.msra.gmra.mrb[2].mxu1 %vm36_vm3, %v277_v35  ;;  %1114 = vmatprep.subr.mxu1 %v1185_v2 }
 0x1cf   :  { %v439_v37 = vpop.permute.xlu1 %438  ;;  %1116 = vmatprep.mubr.msk.f32.mxu1 %vm1186_vm0, %v1185_v2 }
 0x1d0   :  { %v440_v39 = vsel %vm33_vm1, %v437_v23, %v439_v37 }
 0x1d1   :  { %1115 = vmatpush3.msra.mxu1 %v440_v39 }
 0x1d2   :  { %1117 = vmatmul.mubr.msk.f32.vlgmr.msra.gmra.mrb[4].mxu1 %vm36_vm3, %v1051_v38  ;;  %1124 = vmatprep.subr.mxu1 %v1185_v2 }
 0x1d3   :  { %v616_v41 = vpop.permute.xlu1 %615  ;;  %1126 = vmatprep.mubr.msk.f32.mxu1 %vm1186_vm0, %v1185_v2 }
 0x1d4   :  { %v617_v42 = vsel %vm114_vm2, %v614_v40, %v616_v41 }
 0x1d5   :  { %1125 = vmatpush3.msra.mxu1 %v617_v42 }
 0x1d6   :  { %1127 = vmatmul.mubr.msk.f32.vlgmr.msra.gmra.mrb[6].mxu1 %vm36_vm3, %v1259_v11  ;;  %1134 = vmatprep.subr.mxu1 %v1185_v2 }
 0x1d7   :  { %1136 = vmatprep.mubr.msk.f32.mxu1 %vm1186_vm0, %v1185_v2  ;;  %v783_v49 = vpop.permute.xlu1 %782 }
 0x1db   :  { %v936_v50 = vpop.permute.xlu1 %935 }
 0x1ec   :  { %v520_v55 = vpop.permute.xlu1 %519 }
 0x22d   :  { %v430_v43 = vpop.f32.mrb[4].mxu0 }
 0x22e   :  { %v1113_v44 = vpop.f32.mrb[5].mxu0 }
 0x231   :  { %v609_v45 = vpop.f32.mrb[6].mxu0 }
 0x232   :  { %v1123_v46 = vpop.f32.mrb[7].mxu0 }
 0x235   :  { %v762_v47 = vpop.f32.mrb[8].mxu0 }
 0x236   :  { %v1133_v48 = vpop.f32.mrb[9].mxu0 }
 0x2a1   :  { %v357_v51 = vpop.f32.mrb[2].mxu1 }
 0x2a2   :  { %v431_v52 = vadd.f32 %v430_v43, %v357_v51  ;;  %v1108_v53 = vpop.f32.mrb[3].mxu1 }
 0x2a5   :  { %v511_v54 = vpop.f32.mrb[4].mxu1 }
 0x2a6   :  { %v515_v56 = vadd.f32 %v511_v54, %v431_v52  ;;  %v1118_v57 = vpop.f32.mrb[5].mxu1 }
 0x2a8   :  { %v522_v58 = vadd.f32 %v520_v55, %v515_v56 }
 0x2a9   :  { %v688_v59 = vpop.f32.mrb[6].mxu1 }
 0x2aa   :  { %v523_v60 = vmax.f32 %v522_v58, 0.0  ;;  %v689_v61 = vadd.f32 %v688_v59, %v609_v45  ;;  %v1128_v62 = vpop.f32.mrb[7].mxu1 }
 0x2ac   :  { %v524_v63 = vadd.f32 %v523_v60, %v1229_v1  ;;  %v766_v0 = vadd.f32 %v762_v47, %v689_v61 }
 0x2ae   :  { %v525_v4 = vmax.f32 %v524_v63, 0.0  ;;  %v773_v5 = vadd.f32 %v771_v3, %v766_v0 }
 0x2b0   :  { %526 = vst [vmem:[#allocation3] sm:$0xff] %v525_v4  ;;  %v774_v6 = vmax.f32 %v773_v5, 0.0 }
 0x2b2   :  { %784 = vrot.lane.b32.xlu0 %v774_v6, %s1183_s20  ;;  %1140 = vmatpush3.msra.mxu0 %v774_v6 }
 0x2b3   :  { %1142 = vmatmul.mubr.msk.f32.vlgmr.msra.gmra.mrb[10].mxu0 %vm36_vm3, %v1290_v31 }
 0x2b6   :  { %937 = vrot.lane.b32.xlu0 %v774_v6, %s1184_s21 }
 0x2ba   :  { %1018 = vperm.xlu0 %1157, %v516_v33  }
 0x324   :  { %v785_v7 = vpop.permute.xlu0 %784 }
 0x325   :  { %v786_v8 = vsel %vm114_vm2, %v783_v49, %v785_v7 }
 0x326   :  { %1135 = vmatpush3.msra.mxu1 %v786_v8 }
 0x327   :  { %1137 = vmatmul.mubr.msk.f32.vlgmr.msra.gmra.mrb[8].mxu1 %vm36_vm3, %v277_v35  ;;  %1144 = vmatprep.subr.mxu1 %v1185_v2 }
 0x328   :  { %v938_v1 = vpop.permute.xlu0 %937  ;;  %1146 = vmatprep.mubr.msk.f32.mxu1 %vm1186_vm0, %v1185_v2 }
 0x329   :  { %v939_v9 = vsel %vm33_vm1, %v936_v50, %v938_v1 }
 0x32a   :  { %1145 = vmatpush3.msra.mxu1 %v939_v9 }
 0x32b   :  { %1147 = vmatmul.mubr.msk.f32.vlgmr.msra.gmra.mrb[10].mxu1 %vm36_vm3, %v1051_v38 }
 0x339   :  { %v1019_v19 = vpop.permute.xlu0 %1018 }
 0x386   :  { %v930_v10 = vpop.f32.mrb[10].mxu0 }
 0x387   :  { %v1143_v11 = vpop.f32.mrb[11].mxu0 }
 0x3fa   :  { %v857_v12 = vpop.f32.mrb[8].mxu1 }
 0x3fb   :  { %v931_v13 = vadd.f32 %v930_v10, %v857_v12  ;;  %v1138_v14 = vpop.f32.mrb[9].mxu1 }
 0x3fe   :  { %v1010_v16 = vpop.f32.mrb[10].mxu1 }
 0x3ff   :  { %v1014_v17 = vadd.f32 %v1010_v16, %v931_v13  ;;  %v1148_v18 = vpop.f32.mrb[11].mxu1 }
 0x401   :  { %v1021_v20 = vadd.f32 %v1019_v19, %v1014_v17 }
 0x403   :  { %v1022_v21 = vmax.f32 %v1021_v20, 0.0 }
 0x405   :  { %v1023_v2 = vadd.f32 %v1283_v15, %v1022_v21 }
 0x407   :  { %v1024_v22 = vmax.f32 %v1023_v2, 0.0 }
 0x409   :  { %1026 = vst [vmem:[#allocation3 + $0x8] sm:$0xff] %v1024_v22 }
 0x40a   :  { %1170 = shalt.err (!%p1167_p4)
}
 0x40b   :  { %s1171_s19 = scalar_lea.hbm %s1370_s5, 256 }
 0x40c   :  { %p1172_p5 = scmp.ne.s32.totalorder %s1370_s5, %s1171_s19  ;;  %p1175_p6 = scmp.lt.u32.totalorder %s1171_s19, %s1370_s5 }
 0x40e   :  { %p1177_p7 = pnand %p1175_p6, %p1172_p5 }
 0x410   :  { %1180 = shalt.err (!%p1177_p7)
}
 0x411   :  { %s1189_s24 = smov 128   ;;  %s1190_s25 = smov 8  }
 0x412   :  { %1038 = dma.vmem_to_hbm [thread:$0]  %s1033_s4, 256, %s1370_s5, [#allocation4], %s1189_s24, %s1189_s24, %s1190_s25  }
 0x413   :  { %1181 = dma.done.wait [#allocation4], 256  }
 0x414   :  { %1182 = vsyncadd [#allocation4], 4294967040 }
 0x415   :  { %1042 = vsyncpa [#allocation4], 1 }

</bundles_post_ra>
